<compile_context>
chip_gen: v7x
topology: tpu7x:2x2x1
jax: 0.10.0
libtpu: 0.0.40
codegen_flags: <defaults>
</compile_context>

<pallas_src>
import jax
import jax.numpy as jnp
from jax.experimental import pallas as pl
from jax.experimental.pallas import tpu as pltpu

INPUT_SIZE = 151
HIDDEN = 128
NUM_CLASSES = 3
N_OUT = 8          # fc2 output padded 3 -> 8 (tiny writeback; full-last-dim blocks)
MAX_TB = 2048      # batch-tile rows (multiple of 16)


def _round_up(x, m):
    return (x + m - 1) // m * m


def mlp_kernel(x_ref, w1_ref, b1_ref, w2_ref, b2_ref, o_ref):
    # In-kernel cast of the streamed activations (no wrapper-side padded copy).
    x = x_ref[...].astype(w1_ref.dtype)
    # fc1 on the MXU (f32 accumulate); bias + ReLU on the VPU in f32.
    h = jnp.dot(x, w1_ref[...], preferred_element_type=jnp.float32)
    h = jnp.maximum(h + b1_ref[...], 0.0)
    # fc2 on the MXU (narrow N is fine: the MXU is nowhere near the bottleneck).
    y = jnp.dot(h.astype(w2_ref.dtype), w2_ref[...],
                preferred_element_type=jnp.float32)
    o_ref[...] = (y + b2_ref[...]).astype(o_ref.dtype)


def simple_classifier(x, w1, b1, w2, b2, *, compute_dtype=jnp.bfloat16):
    """x: (B, 151) f32, w1: (151, 128), b1: (128,), w2: (128, 3), b2: (3,).

    Returns (B, 3) f32. x is streamed in batch tiles with no wrapper-side
    padding/copy; weights are VMEM-resident across grid steps; MXU inputs are
    `compute_dtype` (bf16 default) with f32 accumulation and f32 epilogue.
    """
    B = x.shape[0]

    # --- batch tiling: big tiles, but >= 2 grid steps when the batch permits
    #     (v7x has 2 TensorCores; a single giant tile would idle one of them).
    b_ceil = _round_up(max(B, 1), 16)
    tb = min(MAX_TB, max(16, _round_up(pl.cdiv(b_ceil, 2), 16)))
    grid = (pl.cdiv(B, tb),)

    # --- tiny one-time weight prep (weights stay VMEM-resident across the grid)
    w1c = w1.astype(compute_dtype)                                  # (151, 128)
    b1c = b1.reshape(1, HIDDEN).astype(jnp.float32)                 # (1, 128)
    w2p = jnp.zeros((HIDDEN, N_OUT), compute_dtype)
    w2p = w2p.at[:, :NUM_CLASSES].set(w2.astype(compute_dtype))     # (128, 8)
    b2p = jnp.zeros((1, N_OUT), jnp.float32)
    b2p = b2p.at[0, :NUM_CLASSES].set(b2.astype(jnp.float32))       # (1, 8)

    flops = 2 * B * (INPUT_SIZE * HIDDEN + HIDDEN * N_OUT)
    bytes_accessed = (B * INPUT_SIZE * x.dtype.itemsize             # x read
                      + B * N_OUT * 4                               # out write
                      + (INPUT_SIZE * HIDDEN + HIDDEN * N_OUT) * w1c.dtype.itemsize
                      + (HIDDEN + N_OUT) * 4)

    out = pl.pallas_call(
        mlp_kernel,
        out_shape=jax.ShapeDtypeStruct((B, N_OUT), jnp.float32),
        grid=grid,
        in_specs=[
            pl.BlockSpec((tb, INPUT_SIZE), lambda i: (i, 0)),       # x: streamed, unpadded
            pl.BlockSpec((INPUT_SIZE, HIDDEN), lambda i: (0, 0)),   # w1: VMEM-resident
            pl.BlockSpec((1, HIDDEN), lambda i: (0, 0)),            # b1: VMEM-resident
            pl.BlockSpec((HIDDEN, N_OUT), lambda i: (0, 0)),        # w2: VMEM-resident
            pl.BlockSpec((1, N_OUT), lambda i: (0, 0)),             # b2: VMEM-resident
        ],
        out_specs=pl.BlockSpec((tb, N_OUT), lambda i: (i, 0)),
        compiler_params=pltpu.CompilerParams(
            dimension_semantics=("parallel",),   # shard batch tiles across TCs on v7x
            vmem_limit_bytes=32 * 1024 * 1024,
        ),
        cost_estimate=pl.CostEstimate(
            flops=flops, transcendentals=0, bytes_accessed=bytes_accessed),
    )(x, w1c, b1c, w2p, b2p)

    # Drop the tiny lane padding of the 3-class output. Out-of-range rows of the
    # last (ragged) batch tile are never written by Pallas' bounded output DMA.
    return out[:, :NUM_CLASSES]


def init_params(key):
    """Deterministic PyTorch-style init: U(-1/sqrt(fan_in), 1/sqrt(fan_in))."""
    k1, k2, k3, k4 = jax.random.split(key, 4)
    bound1 = 1.0 / jnp.sqrt(jnp.float32(INPUT_SIZE))
    bound2 = 1.0 / jnp.sqrt(jnp.float32(HIDDEN))
    w1 = jax.random.uniform(k1, (INPUT_SIZE, HIDDEN), jnp.float32, -bound1, bound1)
    b1 = jax.random.uniform(k2, (HIDDEN,), jnp.float32, -bound1, bound1)
    w2 = jax.random.uniform(k3, (HIDDEN, NUM_CLASSES), jnp.float32, -bound2, bound2)
    b2 = jax.random.uniform(k4, (NUM_CLASSES,), jnp.float32, -bound2, bound2)
    return w1, b1, w2, b2


def ref_forward(x, w1, b1, w2, b2):
    """High-precision plain-JAX reference of the PyTorch forward."""
    h = jnp.dot(x, w1, precision=jax.lax.Precision.HIGHEST) + b1.reshape(1, -1)
    h = jnp.maximum(h, 0.0)
    y = jnp.dot(h, w2, precision=jax.lax.Precision.HIGHEST) + b2.reshape(1, -1)
    return y


if __name__ == "__main__":
    key = jax.random.PRNGKey(0)
    kx, kp, kx2 = jax.random.split(key, 3)

    w1, b1, w2, b2 = init_params(kp)

    # --- small batch: correctness of the single-step grid -------------------
    B = 8
    x = jax.random.normal(kx, (B, INPUT_SIZE), jnp.float32)
    ref = ref_forward(x, w1, b1, w2, b2)

    # f32 MXU path (tight check against high-precision reference)
    out_f32 = jax.block_until_ready(
        simple_classifier(x, w1, b1, w2, b2, compute_dtype=jnp.float32))
    assert out_f32.shape == (B, NUM_CLASSES)
    assert jnp.allclose(out_f32, ref, atol=2e-3, rtol=2e-3)

    # bf16 MXU path (default; looser tolerance vs f32 reference)
    out_bf16 = jax.block_until_ready(simple_classifier(x, w1, b1, w2, b2))
    assert out_bf16.shape == (B, NUM_CLASSES)
    assert jnp.allclose(out_bf16, ref, atol=3e-2, rtol=3e-2)

    # --- larger, non-multiple batch: exercises the 2-step grid + ragged tile
    B2 = 1000
    x2 = jax.random.normal(kx2, (B2, INPUT_SIZE), jnp.float32)
    ref2 = ref_forward(x2, w1, b1, w2, b2)
    out2 = jax.block_until_ready(simple_classifier(x2, w1, b1, w2, b2))
    assert out2.shape == (B2, NUM_CLASSES)
    assert jnp.allclose(out2, ref2, atol=3e-2, rtol=3e-2)

    print("KERNEL_OK")
</pallas_src>

<mosaic_0001>
module attributes {stable_mosaic.version = 11 : i64} {
  func.func @mlp_kernel(%arg0: i32, %arg1: memref<16x151xf32, #tpu.memory_space<vmem>>, %arg2: memref<151x128xf32, #tpu.memory_space<vmem>>, %arg3: memref<1x128xf32, #tpu.memory_space<vmem>>, %arg4: memref<128x8xf32, #tpu.memory_space<vmem>>, %arg5: memref<1x8xf32, #tpu.memory_space<vmem>>, %arg6: memref<16x8xf32, #tpu.memory_space<vmem>>) attributes {dimension_semantics = [#tpu.dimension_semantics<parallel>], iteration_bounds = array<i64: 1>, scalar_prefetch = 0 : i64, scratch_operands = 0 : i64, tpu.core_type = #tpu.core_type<tc>, window_params = [{transform_indices = @transform_0, window_bounds = array<i64: 16, 151>}, {pipeline_mode = #tpu.pipeline_mode<synchronous>, transform_indices = @transform_1, window_bounds = array<i64: 151, 128>}, {pipeline_mode = #tpu.pipeline_mode<synchronous>, transform_indices = @transform_2, window_bounds = array<i64: 1, 128>}, {pipeline_mode = #tpu.pipeline_mode<synchronous>, transform_indices = @transform_3, window_bounds = array<i64: 128, 8>}, {pipeline_mode = #tpu.pipeline_mode<synchronous>, transform_indices = @transform_4, window_bounds = array<i64: 1, 8>}, {transform_indices = @transform_5, window_bounds = array<i64: 16, 8>}]} {
    %c0 = arith.constant 0 : index
    %c0_0 = arith.constant 0 : index
    %0 = vector.load %arg1[%c0, %c0_0] : memref<16x151xf32, #tpu.memory_space<vmem>>, vector<16x151xf32>
    %c0_1 = arith.constant 0 : index
    %c0_2 = arith.constant 0 : index
    %1 = vector.load %arg2[%c0_1, %c0_2] : memref<151x128xf32, #tpu.memory_space<vmem>>, vector<151x128xf32>
    %cst = arith.constant dense<0.000000e+00> : vector<16x128xf32>
    %2 = tpu.matmul %0, %1, %cst {dimension_numbers = #tpu.dot_dimension_numbers<[1], [0], [0], [1], [0, 0, 1, 1], [], []>} : vector<16x151xf32>, vector<151x128xf32>, vector<16x128xf32> -> vector<16x128xf32>
    %c0_3 = arith.constant 0 : index
    %c0_4 = arith.constant 0 : index
    %3 = vector.load %arg3[%c0_3, %c0_4] : memref<1x128xf32, #tpu.memory_space<vmem>>, vector<1x128xf32>
    %4 = vector.broadcast %3 : vector<1x128xf32> to vector<16x128xf32>
    %5 = arith.addf %2, %4 : vector<16x128xf32>
    %cst_5 = arith.constant 0.000000e+00 : f32
    %6 = vector.broadcast %cst_5 : f32 to vector<16x128xf32>
    %7 = arith.maximumf %5, %6 : vector<16x128xf32>
    %c0_6 = arith.constant 0 : index
    %c0_7 = arith.constant 0 : index
    %8 = vector.load %arg4[%c0_6, %c0_7] : memref<128x8xf32, #tpu.memory_space<vmem>>, vector<128x8xf32>
    %cst_8 = arith.constant dense<0.000000e+00> : vector<16x8xf32>
    %9 = tpu.matmul %7, %8, %cst_8 {dimension_numbers = #tpu.dot_dimension_numbers<[1], [0], [0], [1], [0, 0, 1, 1], [], []>} : vector<16x128xf32>, vector<128x8xf32>, vector<16x8xf32> -> vector<16x8xf32>
    %c0_9 = arith.constant 0 : index
    %c0_10 = arith.constant 0 : index
    %10 = vector.load %arg5[%c0_9, %c0_10] : memref<1x8xf32, #tpu.memory_space<vmem>>, vector<1x8xf32>
    %11 = vector.broadcast %10 : vector<1x8xf32> to vector<16x8xf32>
    %12 = arith.addf %9, %11 : vector<16x8xf32>
    %c0_11 = arith.constant 0 : index
    %c0_12 = arith.constant 0 : index
    %13 = vector.load %arg6[%c0_11, %c0_12] : memref<16x8xf32, #tpu.memory_space<vmem>>, vector<16x8xf32>
    tpu.vector_store %arg6[%c0_11, %c0_12], %12 {strides = array<i32>} : memref<16x8xf32, #tpu.memory_space<vmem>>, vector<16x8xf32>,
    return
  }
  func.func @transform_0(%arg0: i32) -> (i32, i32) {
    %c0_i32 = arith.constant 0 : i32
    %c0_i32_0 = arith.constant 0 : i32
    return %arg0, %c0_i32 : i32, i32
  }
  func.func @transform_1(%arg0: i32) -> (i32, i32) {
    %c0_i32 = arith.constant 0 : i32
    %c0_i32_0 = arith.constant 0 : i32
    %c0_i32_1 = arith.constant 0 : i32
    return %c0_i32, %c0_i32_0 : i32, i32
  }
  func.func @transform_2(%arg0: i32) -> (i32, i32) {
    %c0_i32 = arith.constant 0 : i32
    %c0_i32_0 = arith.constant 0 : i32
    %c0_i32_1 = arith.constant 0 : i32
    return %c0_i32, %c0_i32_0 : i32, i32
  }
  func.func @transform_3(%arg0: i32) -> (i32, i32) {
    %c0_i32 = arith.constant 0 : i32
    %c0_i32_0 = arith.constant 0 : i32
    %c0_i32_1 = arith.constant 0 : i32
    return %c0_i32, %c0_i32_0 : i32, i32
  }
  func.func @transform_4(%arg0: i32) -> (i32, i32) {
    %c0_i32 = arith.constant 0 : i32
    %c0_i32_0 = arith.constant 0 : i32
    %c0_i32_1 = arith.constant 0 : i32
    return %c0_i32, %c0_i32_0 : i32, i32
  }
  func.func @transform_5(%arg0: i32) -> (i32, i32) {
    %c0_i32 = arith.constant 0 : i32
    %c0_i32_0 = arith.constant 0 : i32
    return %arg0, %c0_i32 : i32, i32
  }
}

</mosaic_0001>

<bundles_post_ra>
// kernel: tpu_custom_call.1
= control target key start
LH: loop header
LB: loop body
LE: loop exit
PB: predicated region body
PF: predicated region fallthrough
CT: control target
= control target key end

     0   :  { %10 = vsyncpa [#allocation3], 0  ;;  %s585_s0 = inlined_call_operand.vmem [shape: f32[8,151], index: 0, kind: input, shape index: {}]   ;;  %s586_s1 = inlined_call_operand.hbm [shape: f32[151,128], index: 1, kind: input, shape index: {}]   ;;  %s587_s2 = inlined_call_operand.vmem [shape: f32[1,128], index: 2, kind: input, shape index: {}]   ;;  %s588_s3 = inlined_call_operand.vmem [shape: f32[128,8], index: 3, kind: input, shape index: {}]   ;;  %s589_s4 = inlined_call_operand.vmem [shape: f32[1,8], index: 4, kind: input, shape index: {}]   ;;  %s590_s5 = inlined_call_operand.hbm [shape: f32[8,8], index: 5, kind: output, shape index: {}]  }
   0x1   :  { %11 = vsyncpa [#allocation4], 0  ;;  %s442_s18 = smov [#allocation2]   ;;  %s394_s22 = scalar_lea.hbm %s586_s1, 2432 }
   0x2   :  { %s19_s19 = sshll.u32 %s442_s18, 4  ;;  %p395_p0 = scmp.ne.s32.totalorder %s586_s1, %s394_s22  ;;  %s20_s19 = int_to_ptr.vmem [resolvable:$true] %s19_s19 }
   0x3   :  { %p398_p1 = scmp.lt.u32.totalorder %s394_s22, %s586_s1 }
   0x5   :  { %p400_p2 = pnand %p398_p1, %p395_p0 }
   0x7   :  { %403 = shalt.err (!%p400_p2)
}
   0x8   :  { %s404_s27 = scalar_lea.vmem %s20_s19, 2432  ;;  %p409_p4 = scmp.lt.s32.totalorder %s20_s19, %s20_s19 }
   0x9   :  { %p405_p3 = scmp.ne.s32.totalorder %s20_s19, %s404_s27  ;;  %p410_p5 = scmp.lt.s32.totalorder %s404_s27, %s404_s27 }
   0xb   :  { %p411_p6 = por %p410_p5, %p409_p4 }
   0xd   :  { %p412_p7 = pnand %p411_p6, %p405_p3 }
   0xf   :  { %415 = shalt.err (!%p412_p7)
}
  0x10   :  { %s443_s28 = smov 128   ;;  %s444_s29 = smov 8  }
  0x11   :  { %25 = dma.hbm_to_vmem [thread:$0]  %s586_s1, 2432, %s20_s19, [#allocation3], %s443_s28, %s443_s28, %s444_s29  }
  0x12   :  { %438 = dma.done.wait [#allocation3], 2432  }
  0x13   :  { %439 = vsyncadd [#allocation3], 4294964864  ;;  %v445_v0 = vmov 0.0|0.0   ;;  %v39_v1 = vld [vmem:[#allocation2] sm:$0xff]  ;;  %v40_v2 = vld [vmem:[#allocation2 + $0x8] sm:$0xff]  ;;  %vm65_vm0 = vcmask 187392  }
  0x14   :  { %329 = vmatprep.subr.bf16.mxu0 %v445_v0  ;;  %v41_v3 = vld [vmem:[#allocation2 + $0x10] sm:$0xff]  ;;  %v330_v4 = vpack.c.bf16 %v40_v2, %v39_v1  ;;  %v42_v5 = vld [vmem:[#allocation2 + $0x18] sm:$0xff]  ;;  %v43_v7 = vld [vmem:[#allocation2 + $0x20] sm:$0xff]  ;;  %v446_v47 = vmov 0.0   ;;  %vm72_vm1 = vcmask 1046528   ;;  %vm251_vm2 = vcmask 64512  }
  0x15   :  { %v333_v6 = vpack.c.bf16 %v42_v5, %v41_v3  ;;  %v44_v8 = vld [vmem:[#allocation2 + $0x28] sm:$0xff]  ;;  %v45_v11 = vld [vmem:[#allocation2 + $0x30] sm:$0xff]  ;;  %v46_v12 = vld [vmem:[#allocation2 + $0x38] sm:$0xff] }
  0x16   :  { %331 = vmatpush1.bf16.msra.mxu0 %v330_v4  ;;  %v36_v9 = vld [vmem:[%s585_s0 + $0x8] sm:$0xff]  ;;  %v336_v10 = vpack.c.bf16 %v44_v8, %v43_v7  ;;  %v153_v13 = vld [vmem:[%s588_s3] sm:$0xff]  ;;  %v155_v15 = vld [vmem:[%s588_s3 + $0x10] sm:$0xff]  ;;  %v339_v21 = vpack.c.bf16 %v46_v12, %v45_v11 }
  0x17   :  { %332 = vmatprep.subr.bf16.mxu0 %v445_v0  ;;  %273 = vmatprep.mubr.msk.f32.mxu0 %vm65_vm0, %v36_v9  ;;  %v154_v14 = vld [vmem:[%s588_s3 + $0x8] sm:$0xff]  ;;  %v156_v16 = vld [vmem:[%s588_s3 + $0x18] sm:$0xff]  ;;  %v157_v19 = vld [vmem:[%s588_s3 + $0x20] sm:$0xff] }
  0x18   :  { %v356_v17 = vpack.c.bf16 %v154_v14, %v153_v13  ;;  %v360_v18 = vpack.c.bf16 %v156_v16, %v155_v15  ;;  %v158_v20 = vld [vmem:[%s588_s3 + $0x28] sm:$0xff]  ;;  %v47_v22 = vld [vmem:[#allocation2 + $0x40] sm:$0xff]  ;;  %v159_v25 = vld [vmem:[%s588_s3 + $0x30] sm:$0xff] }
  0x19   :  { %v48_v23 = vld [vmem:[#allocation2 + $0x48] sm:$0xff]  ;;  %v364_v24 = vpack.c.bf16 %v158_v20, %v157_v19  ;;  %v160_v26 = vld [vmem:[%s588_s3 + $0x38] sm:$0xff]  ;;  %v49_v28 = vld [vmem:[#allocation2 + $0x50] sm:$0xff] }
  0x1a   :  { %334 = vmatpush1.bf16.msra.mxu0 %v333_v6  ;;  %357 = vmatprep.subr.bf16.mxu1 %v356_v17  ;;  %v342_v27 = vpack.c.bf16 %v48_v23, %v47_v22  ;;  %v50_v29 = vld [vmem:[#allocation2 + $0x58] sm:$0xff]  ;;  %v368_v30 = vpack.c.bf16 %v160_v26, %v159_v25  ;;  %v161_v31 = vld [vmem:[%s588_s3 + $0x40] sm:$0xff]  ;;  %v162_v32 = vld [vmem:[%s588_s3 + $0x48] sm:$0xff] }
  0x1b   :  { %335 = vmatprep.subr.bf16.mxu0 %v445_v0  ;;  %359 = vmatpush3.bf16.msra.mxu1 %v356_v17  ;;  %v345_v33 = vpack.c.bf16 %v50_v29, %v49_v28  ;;  %v51_v34 = vld [vmem:[#allocation2 + $0x60] sm:$0xff]  ;;  %v52_v35 = vld [vmem:[#allocation2 + $0x68] sm:$0xff]  ;;  %v372_v36 = vpack.c.bf16 %v162_v32, %v161_v31  ;;  %v163_v37 = vld [vmem:[%s588_s3 + $0x50] sm:$0xff] }
  0x1c   :  { %361 = vmatprep.subr.bf16.mxu1 %v360_v18  ;;  %v164_v38 = vld [vmem:[%s588_s3 + $0x58] sm:$0xff]  ;;  %v348_v39 = vpack.c.bf16 %v52_v35, %v51_v34  ;;  %v53_v40 = vld [vmem:[#allocation2 + $0x70] sm:$0xff]  ;;  %v55_v44 = vld [vmem:[#allocation2 + $0x80] sm:$0xff] }
  0x1d   :  { %v54_v41 = vld [vmem:[#allocation2 + $0x78] sm:$0xff]  ;;  %v376_v42 = vpack.c.bf16 %v164_v38, %v163_v37  ;;  %v56_v45 = vld [vmem:[#allocation2 + $0x88] sm:$0xff]  ;;  %v57_v48 = vld [vmem:[#allocation2 + $0x90] sm:$0x7f] }
  0x1e   :  { %337 = vmatpush1.bf16.msra.mxu0 %v336_v10  ;;  %v351_v43 = vpack.c.bf16 %v54_v41, %v53_v40  ;;  %v354_v46 = vpack.c.bf16 %v56_v45, %v55_v44  ;;  %v35_v49 = vld [vmem:[%s585_s0] sm:$0xff]  ;;  %v38_v50 = vld [vmem:[%s585_s0 + $0x18] sm:$0xff]  ;;  %v37_v51 = vld [vmem:[%s585_s0 + $0x10] sm:$0xff] }
  0x1f   :  { %338 = vmatprep.subr.bf16.mxu0 %v445_v0  ;;  %363 = vmatpush3.bf16.msra.mxu1 %v360_v18  ;;  %v165_v52 = vld [vmem:[%s588_s3 + $0x60] sm:$0xff]  ;;  %v166_v53 = vld [vmem:[%s588_s3 + $0x68] sm:$0xff]  ;;  %v167_v55 = vld [vmem:[%s588_s3 + $0x70] sm:$0xff] }
  0x20   :  { %365 = vmatprep.subr.bf16.mxu1 %v364_v24  ;;  %v380_v54 = vpack.c.bf16 %v166_v53, %v165_v52  ;;  %v168_v56 = vld [vmem:[%s588_s3 + $0x78] sm:$0xff]  ;;  %v271_v58 = vld [vmem:[%s587_s2] ss:$0 sm:$0xff] }
  0x21   :  { %v384_v57 = vpack.c.bf16 %v168_v56, %v167_v55  ;;  %v275_v3 = vld [vmem:[%s589_s4] ss:$0 sm:$0xff] }
  0x22   :  { %340 = vmatpush1.bf16.msra.mxu0 %v339_v21 }
  0x23   :  { %341 = vmatprep.subr.bf16.mxu0 %v445_v0  ;;  %367 = vmatpush3.bf16.msra.mxu1 %v364_v24 }
  0x24   :  { %369 = vmatprep.subr.bf16.mxu1 %v368_v30 }
  0x26   :  { %343 = vmatpush1.bf16.msra.mxu0 %v342_v27 }
  0x27   :  { %344 = vmatprep.subr.bf16.mxu0 %v445_v0  ;;  %371 = vmatpush3.bf16.msra.mxu1 %v368_v30 }
  0x28   :  { %373 = vmatprep.subr.bf16.mxu1 %v372_v36 }
  0x2a   :  { %346 = vmatpush1.bf16.msra.mxu0 %v345_v33 }
  0x2b   :  { %347 = vmatprep.subr.bf16.mxu0 %v445_v0  ;;  %375 = vmatpush3.bf16.msra.mxu1 %v372_v36 }
  0x2c   :  { %377 = vmatprep.subr.bf16.mxu1 %v376_v42 }
  0x2e   :  { %349 = vmatpush1.bf16.msra.mxu0 %v348_v39 }
  0x2f   :  { %350 = vmatprep.subr.bf16.mxu0 %v445_v0  ;;  %379 = vmatpush3.bf16.msra.mxu1 %v376_v42 }
  0x30   :  { %381 = vmatprep.subr.bf16.mxu1 %v380_v54 }
  0x32   :  { %352 = vmatpush1.bf16.msra.mxu0 %v351_v43 }
  0x33   :  { %353 = vmatprep.subr.bf16.mxu0 %v445_v0  ;;  %383 = vmatpush3.bf16.msra.mxu1 %v380_v54 }
  0x34   :  { %385 = vmatprep.subr.bf16.mxu1 %v384_v57 }
  0x36   :  { %355 = vmatpush1.bf16.msra.mxu0 %v354_v46 }
  0x37   :  { %112 = vmatprep.subr.mxu0 %v446_v47  ;;  %387 = vmatpush3.bf16.msra.mxu1 %v384_v57 }
  0x3a   :  { %272 = vmatpush1.msk.msra.mxu0 %vm72_vm1, %v57_v48 }
  0x3b   :  { %141 = vmatmul.mubr.f32.vlgmr.msra.gmra.mrb[0].mxu0 %v35_v49 }
  0x3c   :  { %274 = vmatprep.mubr.msk.f32.mxu0 %vm65_vm0, %v38_v50 }
  0x3f   :  { %146 = vmatmul.mubr.f32.gmra.mrb[2].mxu0 %v37_v51 }
 0x10e   :  { %v142_v59 = vpop.f32.mrb[0].mxu0 }
 0x10f   :  { %v144_v60 = vpop.f32.mrb[1].mxu0  ;;  %v143_v61 = vadd.f32 %v271_v58, %v142_v59 }
 0x111   :  { %v151_v62 = vmax.f32 %v143_v61, 0.0 }
 0x112   :  { %v147_v63 = vpop.f32.mrb[2].mxu0 }
 0x113   :  { %v148_v0 = vadd.f32 %v271_v58, %v147_v63  ;;  %v149_v1 = vpop.f32.mrb[3].mxu0  ;;  %326 = vmatprep.mubr.f32.mxu1 %v151_v62 }
 0x115   :  { %v152_v2 = vmax.f32 %v148_v0, 0.0 }
 0x117   :  { %327 = vmatmul.mubr.f32.vlgmr.msra.gmra.mrb[0].mxu1 %v152_v2 }
 0x1ea   :  { %v328_v4 = vpop.f32.mrb[0].mxu1 }
 0x1eb   :  { %v248_v5 = vadd.f32 %v328_v4, %v275_v3  ;;  %v242_v6 = vpop.f32.mrb[1].mxu1 }
 0x1ec   :  { %v243_v7 = vadd.f32 %v275_v3, %v242_v6 }
 0x1ed   :  { %253 = vst.msk [vmem:[#allocation5 + $0x8] sm:$0xff] %vm251_vm2, %v248_v5 }
 0x1ee   :  { %252 = vst.msk [vmem:[#allocation5] sm:$0xff] %vm251_vm2, %v243_v7 }
 0x1ef   :  { %258 = vsyncadd [#allocation4], 128  ;;  %s447_s2 = smov [#allocation5]  }
 0x1f0   :  { %s259_s3 = sshll.u32 %s447_s2, 4  ;;  %s260_s3 = int_to_ptr.vmem [resolvable:$true] %s259_s3 }
 0x1f1   :  { %s416_s25 = scalar_lea.vmem %s260_s3, 128  ;;  %s420_s26 = scalar_lea.vmem %s260_s3, 256 }
 0x1f2   :  { %p417_p8 = scmp.ne.s32.totalorder %s260_s3, %s416_s25  ;;  %p421_p9 = scmp.lt.s32.totalorder %s260_s3, %s260_s3 }
 0x1f3   :  { %p422_p10 = scmp.lt.s32.totalorder %s420_s26, %s416_s25 }
 0x1f5   :  { %p423_p11 = por %p422_p10, %p421_p9 }
 0x1f7   :  { %p424_p12 = pnand %p423_p11, %p417_p8 }
 0x1f9   :  { %427 = shalt.err (!%p424_p12)
}
 0x1fa   :  { %s428_s30 = scalar_lea.hbm %s590_s5, 128 }
 0x1fb   :  { %p429_p13 = scmp.ne.s32.totalorder %s590_s5, %s428_s30  ;;  %p432_p0 = scmp.lt.u32.totalorder %s428_s30, %s590_s5 }
 0x1fd   :  { %p434_p1 = pnand %p432_p0, %p429_p13 }
 0x1ff   :  { %437 = shalt.err (!%p434_p1)
}
 0x200   :  { %265 = dma.vmem_to_hbm [thread:$0]  %s260_s3, 128, %s590_s5, [#allocation4], %s443_s28, %s443_s28, %s444_s29  }
 0x201   :  { %440 = dma.done.wait [#allocation4], 256  }
 0x202   :  { %441 = vsyncadd [#allocation4], 4294967040 }
 0x203   :  { %269 = vsyncpa [#allocation3], 1 }
 0x204   :  { %270 = vsyncpa [#allocation4], 1 }

</bundles_post_ra>
